<compile_context>
chip_gen: v7x
topology: tpu7x:2x2x1
jax: 0.10.0
libtpu: 0.0.40
codegen_flags: <defaults>
</compile_context>

<pallas_src>
from functools import partial

import numpy as np
import jax
import jax.numpy as jnp
from jax.experimental import pallas as pl
from jax.experimental.pallas import tpu as pltpu

GROWTH = 32
BLOCK_CONFIG = (6, 12, 24, 16)   # DenseNet121
BN_SIZE = 4
FEAT_DIM = 256
BN_EPS = 1e-5


def _rup(x, m):
    return ((x + m - 1) // m) * m


# ----------------------------- Pallas kernels -------------------------------

def _mm_kernel(a_ref, si_ref, bi_ref, w_ref, so_ref, bo_ref, o_ref, *,
               act_in, act_out):
    """o = act_out((act_in(A*si+bi) @ W) * so + bo).

    A tile f32 -> per-input-channel BN fused -> bf16 for the MXU; W is bf16.
    Full-K blocks (no reduction grid), grid = (M blocks, N blocks)."""
    a = a_ref[...] * si_ref[...] + bi_ref[...]
    if act_in == "relu":
        a = jnp.maximum(a, 0.0)
    y = jnp.dot(a.astype(jnp.bfloat16), w_ref[...],
                preferred_element_type=jnp.float32)
    y = y * so_ref[...] + bo_ref[...]
    if act_out == "relu":
        y = jnp.maximum(y, 0.0)
    elif act_out == "sigmoid":
        y = jax.nn.sigmoid(y)
    o_ref[...] = y


def fused_matmul(a, w_p, so_p, bo_p, si=None, bi=None,
                 act_in="none", act_out="none", n_out=None):
    """a: (M, K) f32 (unpadded). w_p: (K, Np) bf16 pre-padded. so/bo: (1, Np).
    si/bi: optional (1, K) input-channel scale/shift (fused BN before conv)."""
    M, K = a.shape
    Np = w_p.shape[1]
    n_out = Np if n_out is None else n_out
    if si is None:
        si = jnp.ones((1, K), jnp.float32)
        bi = jnp.zeros((1, K), jnp.float32)

    if M <= 512:                       # single full-extent M block, no padding
        tm, Mp, a_p = M, M, a
    else:
        tm = 256
        Mp = _rup(M, tm)
        a_p = a if Mp == M else jnp.zeros((Mp, K), a.dtype).at[:M].set(a)
    tn = Np if Np <= 256 else (256 if Np % 256 == 0 else 128)

    out = pl.pallas_call(
        partial(_mm_kernel, act_in=act_in, act_out=act_out),
        out_shape=jax.ShapeDtypeStruct((Mp, Np), jnp.float32),
        grid_spec=pl.GridSpec(
            grid=(Mp // tm, Np // tn),
            in_specs=[
                pl.BlockSpec((tm, K), lambda i, j: (i, 0)),
                pl.BlockSpec((1, K), lambda i, j: (0, 0)),
                pl.BlockSpec((1, K), lambda i, j: (0, 0)),
                pl.BlockSpec((K, tn), lambda i, j: (0, j)),
                pl.BlockSpec((1, tn), lambda i, j: (0, j)),
                pl.BlockSpec((1, tn), lambda i, j: (0, j)),
            ],
            out_specs=pl.BlockSpec((tm, tn), lambda i, j: (i, j)),
        ),
        compiler_params=pltpu.CompilerParams(
            dimension_semantics=("parallel", "parallel")),
    )(a_p, si, bi, w_p, so_p, bo_p)
    return out[:M, :n_out]


def _conv3x3_kernel(xp_ref, w_ref, so_ref, bo_ref, o_ref, *, H, W, act):
    """Direct 3x3 stride-1 conv for one image: the halo-padded NHWC map is
    loaded once; the 9 shifted taps are assembled in VMEM (no HBM im2col)."""
    x = xp_ref[...]                                          # (H+2, W+2, C)
    C = x.shape[-1]
    cols = [x[di:di + H, dj:dj + W, :].reshape(H * W, C)
            for di in range(3) for dj in range(3)]
    a = jnp.concatenate(cols, axis=-1).astype(jnp.bfloat16)  # (H*W, 9C)
    y = jnp.dot(a, w_ref[...], preferred_element_type=jnp.float32)
    y = y * so_ref[...] + bo_ref[...]
    if act == "relu":
        y = jnp.maximum(y, 0.0)
    o_ref[...] = y


def conv3x3_fused(x, w_p, so_p, bo_p, n_out, act="none"):
    """3x3 / stride 1 / pad 1 conv with fused output scale/shift/activation.
    w_p: (9*C, Np) bf16 pre-packed (tap-major, channel-minor)."""
    N, H, W, C = x.shape
    Np = w_p.shape[1]
    if W % 8 != 0:
        # tiny feature maps: fall back to the im2col + generic matmul path
        patches, Ho, Wo = _im2col(x, 3, 3, 1, 1)
        out = fused_matmul(patches.reshape(N * Ho * Wo, 9 * C),
                           w_p, so_p, bo_p, act_out=act, n_out=n_out)
        return out.reshape(N, Ho, Wo, n_out)

    # TODO(synk): for large H, tile spatially with a halo (pl.Element windows)
    # instead of one whole-image block per grid step.
    xp = jnp.pad(x, ((0, 0), (1, 1), (1, 1), (0, 0)))
    out = pl.pallas_call(
        partial(_conv3x3_kernel, H=H, W=W, act=act),
        out_shape=jax.ShapeDtypeStruct((N, H * W, Np), jnp.float32),
        grid_spec=pl.GridSpec(
            grid=(N,),
            in_specs=[
                pl.BlockSpec((None, H + 2, W + 2, C), lambda n: (n, 0, 0, 0)),
                pl.BlockSpec((9 * C, Np), lambda n: (0, 0)),
                pl.BlockSpec((1, Np), lambda n: (0, 0)),
                pl.BlockSpec((1, Np), lambda n: (0, 0)),
            ],
            out_specs=pl.BlockSpec((None, H * W, Np), lambda n: (n, 0, 0)),
        ),
        compiler_params=pltpu.CompilerParams(dimension_semantics=("parallel",)),
    )(xp, w_p, so_p, bo_p)
    return out[:, :, :n_out].reshape(N, H, W, n_out)


def _att_head_kernel(a_ref, w1_ref, s1_ref, b1_ref, w2_ref, b2_ref, o_ref):
    """attention head: sigmoid( relu(BN(cat @ W1 + b1)) @ w2 + b2 ) fused:
    the 256->1 projection is a VPU multiply + lane reduction in the epilogue."""
    a = a_ref[...].astype(jnp.bfloat16)
    h = jnp.dot(a, w1_ref[...], preferred_element_type=jnp.float32)
    h = jnp.maximum(h * s1_ref[...] + b1_ref[...], 0.0)
    logit = jnp.sum(h * w2_ref[...], axis=1, keepdims=True) + b2_ref[...]
    o_ref[...] = jax.nn.sigmoid(logit)


def attention_head(a, w1_p, s1_p, b1_p, w2_row, b2):
    M, K = a.shape
    C1 = w1_p.shape[1]
    if M <= 512:
        tm, Mp, a_p = M, M, a
    else:
        tm = 256
        Mp = _rup(M, tm)
        a_p = a if Mp == M else jnp.zeros((Mp, K), a.dtype).at[:M].set(a)
    out = pl.pallas_call(
        _att_head_kernel,
        out_shape=jax.ShapeDtypeStruct((Mp, 1), jnp.float32),
        grid_spec=pl.GridSpec(
            grid=(Mp // tm,),
            in_specs=[
                pl.BlockSpec((tm, K), lambda i: (i, 0)),
                pl.BlockSpec((K, C1), lambda i: (0, 0)),
                pl.BlockSpec((1, C1), lambda i: (0, 0)),
                pl.BlockSpec((1, C1), lambda i: (0, 0)),
                pl.BlockSpec((1, C1), lambda i: (0, 0)),
                pl.BlockSpec((1, 1), lambda i: (0, 0)),
            ],
            out_specs=pl.BlockSpec((tm, 1), lambda i: (i, 0)),
        ),
        compiler_params=pltpu.CompilerParams(dimension_semantics=("parallel",)),
    )(a_p, w1_p, s1_p, b1_p, w2_row, b2)
    return out[:M]


def _att_pool_l2norm_kernel(f_ref, a_ref, o_ref):
    f = f_ref[...]                          # (N, HW, C)
    a = a_ref[...]                          # (N, HW, 1)
    s = jnp.sum(f * a, axis=1)              # attention-weighted spatial sum
    ss = jnp.sum(s * s, axis=1, keepdims=True)
    o_ref[...] = s * jax.lax.rsqrt(ss + 1e-10)   # torch l2norm (eps=1e-10)


def att_pool_l2norm(feat_map, att_map):
    # TODO(synk): tile over N / spatial if N*HW*C outgrows a single VMEM block.
    N, H, W, C = feat_map.shape
    f = feat_map.reshape(N, H * W, C)
    a = att_map.reshape(N, H * W, 1)
    return pl.pallas_call(
        _att_pool_l2norm_kernel,
        out_shape=jax.ShapeDtypeStruct((N, C), jnp.float32),
        grid_spec=pl.GridSpec(
            grid=(1,),
            in_specs=[pl.BlockSpec((N, H * W, C), lambda i: (0, 0, 0)),
                      pl.BlockSpec((N, H * W, 1), lambda i: (0, 0, 0))],
            out_specs=pl.BlockSpec((N, C), lambda i: (0, 0))),
    )(f, a)


# ------------------------------ JAX glue ------------------------------------

def _im2col(x, kh, kw, stride, padding):
    """Only used for the single 7x7 stem conv and tiny (W%8!=0) 3x3 maps."""
    N, H, W, C = x.shape
    xp = jnp.pad(x, ((0, 0), (padding, padding), (padding, padding), (0, 0)))
    Ho = (H + 2 * padding - kh) // stride + 1
    Wo = (W + 2 * padding - kw) // stride + 1
    cols = []
    for i in range(kh):
        for j in range(kw):
            cols.append(xp[:, i:i + stride * (Ho - 1) + 1:stride,
                            j:j + stride * (Wo - 1) + 1:stride, :])
    patches = jnp.concatenate(cols, axis=-1)   # (N, Ho, Wo, kh*kw*C)
    return patches, Ho, Wo


# TODO(synk): pooling and bilinear resize are cheap plain-JAX glue.
def maxpool_3x3_s2_p1(x):
    N, H, W, C = x.shape
    xp = jnp.pad(x, ((0, 0), (1, 1), (1, 1), (0, 0)), constant_values=-jnp.inf)
    Ho, Wo = (H + 2 - 3) // 2 + 1, (W + 2 - 3) // 2 + 1
    out = None
    for kh in range(3):
        for kw in range(3):
            sl = xp[:, kh:kh + 2 * (Ho - 1) + 1:2, kw:kw + 2 * (Wo - 1) + 1:2, :]
            out = sl if out is None else jnp.maximum(out, sl)
    return out


def avgpool_2x2(x):
    N, H, W, C = x.shape
    return x.reshape(N, H // 2, 2, W // 2, 2, C).mean(axis=(2, 4))


def _bilinear_matrix(in_size, out_size):
    # F.interpolate(mode='bilinear', align_corners=False) semantics.
    scale = in_size / out_size
    i = np.arange(out_size, dtype=np.float64)
    src = (i + 0.5) * scale - 0.5
    src = np.clip(src, 0.0, in_size - 1)
    i0 = np.floor(src).astype(np.int64)
    i1 = np.minimum(i0 + 1, in_size - 1)
    w1 = src - i0
    w0 = 1.0 - w1
    M = np.zeros((out_size, in_size), np.float32)
    M[np.arange(out_size), i0] += w0.astype(np.float32)
    M[np.arange(out_size), i1] += w1.astype(np.float32)
    return jnp.asarray(M)


def upsample_bilinear(x, out_h, out_w):
    Mh = _bilinear_matrix(x.shape[1], out_h)
    Mw = _bilinear_matrix(x.shape[2], out_w)
    y = jnp.einsum('Oh,nhwc->nOwc', Mh, x)
    y = jnp.einsum('Pw,nOwc->nOPc', Mw, y)
    return y


# ----------------------------- parameters -----------------------------------

def make_params(key0):
    """Deterministic random init; weights pre-packed/padded (bf16) and all
    BatchNorms folded into per-channel scale/shift vectors (eval mode)."""
    kidx = [0]

    def nkey():
        kidx[0] += 1
        return jax.random.fold_in(key0, kidx[0])

    def conv_w(kh, kw, cin, cout):
        std = np.sqrt(2.0 / (kh * kw * cin))
        return jax.random.normal(nkey(), (kh, kw, cin, cout), jnp.float32) * std

    def bias(c):
        return jax.random.normal(nkey(), (c,), jnp.float32) * 0.01

    def bn_scale(c):
        # BatchNorm defaults, eval mode: gamma=1, beta=0, mean=0, var=1.
        return jnp.full((c,), 1.0 / np.sqrt(1.0 + BN_EPS), jnp.float32)

    def pack_w(w):
        kh, kw, cin, cout = w.shape
        K = kh * kw * cin
        Np = max(_rup(cout, 128), 128)
        wp = jnp.zeros((K, Np), jnp.float32).at[:, :cout].set(w.reshape(K, cout))
        return wp.astype(jnp.bfloat16)

    def pack_col(v, Np):
        return jnp.zeros((1, Np), jnp.float32).at[0, :v.shape[0]].set(v)

    def pack_row(v):
        return v.reshape(1, -1)

    p = {}
    # stem: Conv2d(4, 64, 7, s2, p3, bias=False) -> BN -> ReLU
    p['stem_w'] = pack_w(conv_w(7, 7, 4, 64))
    p['stem_so'] = pack_col(bn_scale(64), 128)
    p['stem_bo'] = jnp.zeros((1, 128), jnp.float32)

    ch = 64
    gp = BN_SIZE * GROWTH   # 128
    for bnum, nl in enumerate(BLOCK_CONFIG, start=1):
        layers = []
        for _ in range(nl):
            lp = {}
            lp['si1'] = pack_row(bn_scale(ch))             # norm1 (input-fused)
            lp['bi1'] = jnp.zeros((1, ch), jnp.float32)
            lp['w1'] = pack_w(conv_w(1, 1, ch, gp))        # conv1 (1x1)
            lp['so1'] = pack_col(bn_scale(gp), 128)        # norm2 folded at output
            lp['bo1'] = jnp.zeros((1, 128), jnp.float32)
            lp['w2'] = pack_w(conv_w(3, 3, gp, GROWTH))    # conv2 (3x3)
            lp['so2'] = pack_col(jnp.ones((GROWTH,), jnp.float32), 128)
            lp['bo2'] = jnp.zeros((1, 128), jnp.float32)
            layers.append(lp)
            ch += GROWTH
        p[f'block{bnum}'] = layers
        if bnum < 4:
            tp = {}
            tp['si'] = pack_row(bn_scale(ch))              # transition norm
            tp['bi'] = jnp.zeros((1, ch), jnp.float32)
            cout = ch // 2
            Np = max(_rup(cout, 128), 128)
            tp['w'] = pack_w(conv_w(1, 1, ch, cout))
            tp['so'] = pack_col(jnp.ones((cout,), jnp.float32), Np)
            tp['bo'] = jnp.zeros((1, Np), jnp.float32)
            p[f'trans{bnum}'] = tp
            ch //= 2
    # norm5 (fused as the input transform of back_conv4)
    p['norm5_si'] = pack_row(bn_scale(ch))                 # ch == 1024
    p['norm5_bi'] = jnp.zeros((1, ch), jnp.float32)

    fd = FEAT_DIM

    def head(name, cin, cout, k):
        w = conv_w(k, k, cin, cout)
        b = bias(cout)
        s = bn_scale(cout)
        Np = max(_rup(cout, 128), 128)
        p[name + '_w'] = pack_w(w)
        p[name + '_so'] = pack_col(s, Np)          # BN gamma / sqrt(var+eps)
        p[name + '_bo'] = pack_col(b * s, Np)      # conv bias folded through BN

    head('bc4', 1024, fd, 1)    # back_conv4: conv1x1 + BN + ReLU
    head('bc3', 1024, fd, 1)
    head('bc2', 512, fd, 1)
    head('sm3', fd, fd, 3)      # smooth_conv3: conv3x3 + BN + ReLU
    head('sm2', fd, fd, 3)
    head('conv', fd * 3, fd, 1)   # conv: conv1x1 + BN (no ReLU)
    head('att1', fd * 3, fd, 1)   # attention[0:3]: conv1x1 + BN + ReLU
    p['att2_w'] = conv_w(1, 1, fd, 1).reshape(1, fd)   # attention[3]: 256 -> 1
    p['att2_b'] = bias(1).reshape(1, 1)
    return p


# ----------------------------- model forward --------------------------------

def _dense_layer(x, lp):
    N, H, W, C = x.shape
    # conv1 (1x1): norm1+relu1 fused on the input path, norm2+relu2 on output.
    h = fused_matmul(x.reshape(N * H * W, C), lp['w1'], lp['so1'], lp['bo1'],
                     si=lp['si1'], bi=lp['bi1'], act_in='relu', act_out='relu',
                     n_out=BN_SIZE * GROWTH)
    h = h.reshape(N, H, W, BN_SIZE * GROWTH)
    new = conv3x3_fused(h, lp['w2'], lp['so2'], lp['bo2'],
                        n_out=GROWTH, act='none')
    # TODO(synk): replace growing concat with a pre-allocated channel slab
    # (input_output_aliases) to avoid O(L^2) HBM copies per dense block.
    return jnp.concatenate([x, new], axis=-1)


def _dense_block(x, layers):
    for lp in layers:
        x = _dense_layer(x, lp)
    return x


def _transition(x, tp):
    N, H, W, C = x.shape
    h = fused_matmul(x.reshape(N * H * W, C), tp['w'], tp['so'], tp['bo'],
                     si=tp['si'], bi=tp['bi'], act_in='relu', act_out='none',
                     n_out=C // 2)
    return avgpool_2x2(h.reshape(N, H, W, C // 2))


def forward(params, x_nchw, threshold=None):
    p = params
    x = jnp.transpose(x_nchw, (0, 2, 3, 1)).astype(jnp.float32)  # NCHW -> NHWC
    N = x.shape[0]

    # --- backbone (DenseNet121 features) ---
    patches, Ho, Wo = _im2col(x, 7, 7, 2, 3)
    h = fused_matmul(patches.reshape(N * Ho * Wo, -1), p['stem_w'],
                     p['stem_so'], p['stem_bo'], act_out='relu', n_out=64)
    h = maxpool_3x3_s2_p1(h.reshape(N, Ho, Wo, 64))

    l1 = _dense_block(h, p['block1'])                               # backbone[0]
    l2 = _dense_block(_transition(l1, p['trans1']), p['block2'])    # backbone[1]
    l3 = _dense_block(_transition(l2, p['trans2']), p['block3'])    # backbone[2]
    l4 = _dense_block(_transition(l3, p['trans3']), p['block4'])    # backbone[3] (pre-norm5)

    def conv1x1(t, name, act, si=None, bi=None, act_in='none'):
        Nb, Hh, Ww, Cc = t.shape
        y = fused_matmul(t.reshape(Nb * Hh * Ww, Cc), p[name + '_w'],
                         p[name + '_so'], p[name + '_bo'],
                         si=si, bi=bi, act_in=act_in, act_out=act,
                         n_out=FEAT_DIM)
        return y.reshape(Nb, Hh, Ww, FEAT_DIM)

    # --- FPN head (norm5 fused into back_conv4's input path) ---
    p4 = conv1x1(l4, 'bc4', 'relu', si=p['norm5_si'], bi=p['norm5_bi'])
    c3 = conv1x1(l3, 'bc3', 'relu')
    p3 = upsample_bilinear(p4, c3.shape[1], c3.shape[2]) + c3
    p3 = conv3x3_fused(p3, p['sm3_w'], p['sm3_so'], p['sm3_bo'], FEAT_DIM, 'relu')
    c2 = conv1x1(l2, 'bc2', 'relu')
    p2 = upsample_bilinear(p3, c2.shape[1], c2.shape[2]) + c2
    p2 = conv3x3_fused(p2, p['sm2_w'], p['sm2_so'], p['sm2_bo'], FEAT_DIM, 'relu')

    H2, W2 = p2.shape[1], p2.shape[2]
    cat = jnp.concatenate(
        [p2, upsample_bilinear(p3, H2, W2), upsample_bilinear(p4, H2, W2)], axis=-1)
    cat_flat = cat.reshape(N * H2 * W2, 3 * FEAT_DIM)

    feat_map = fused_matmul(cat_flat, p['conv_w'], p['conv_so'], p['conv_bo'],
                            act_out='none', n_out=FEAT_DIM
                            ).reshape(N, H2, W2, FEAT_DIM)
    att = attention_head(cat_flat, p['att1_w'], p['att1_so'], p['att1_bo'],
                         p['att2_w'], p['att2_b']).reshape(N, H2, W2, 1)
    if threshold is not None:
        att = (att >= threshold).astype(jnp.float32)

    feat = att_pool_l2norm(feat_map, att)                 # (N, FEAT_DIM)
    att_nchw = jnp.transpose(att, (0, 3, 1, 2))           # (N, 1, H2, W2)
    return feat, att_nchw


# ---------------------------------- main -------------------------------------

if __name__ == "__main__":
    key = jax.random.PRNGKey(0)
    params = make_params(key)
    # small but stride-compatible input: batch=2, channels=4 (RGB+edge), 64x64
    x = jax.random.normal(jax.random.fold_in(key, 12345), (2, 4, 64, 64),
                          jnp.float32)

    feat, att = forward(params, x)
    feat = jax.block_until_ready(feat)
    att = jax.block_until_ready(att)

    assert feat.shape == (2, FEAT_DIM)
    assert att.shape == (2, 1, 8, 8)
    assert bool(jnp.all(jnp.isfinite(feat))) and bool(jnp.all(jnp.isfinite(att)))
    # l2norm check: each descriptor row should have unit norm
    assert bool(jnp.all(jnp.abs(jnp.sum(feat * feat, axis=1) - 1.0) < 1e-3))
    print("KERNEL_OK")
</pallas_src>

<mosaic_0001>
module attributes {stable_mosaic.version = 11 : i64} {
  func.func @_mm_kernel(%arg0: i32, %arg1: i32, %arg2: memref<256x196xf32, #tpu.memory_space<vmem>>, %arg3: memref<1x196xf32, #tpu.memory_space<vmem>>, %arg4: memref<1x196xf32, #tpu.memory_space<vmem>>, %arg5: memref<196x128xbf16, #tpu.memory_space<vmem>>, %arg6: memref<1x128xf32, #tpu.memory_space<vmem>>, %arg7: memref<1x128xf32, #tpu.memory_space<vmem>>, %arg8: memref<256x128xf32, #tpu.memory_space<vmem>>) attributes {dimension_semantics = [#tpu.dimension_semantics<parallel>, #tpu.dimension_semantics<parallel>], iteration_bounds = array<i64: 8, 1>, scalar_prefetch = 0 : i64, scratch_operands = 0 : i64, tpu.core_type = #tpu.core_type<tc>, window_params = [{transform_indices = @transform_0, window_bounds = array<i64: 256, 196>}, {pipeline_mode = #tpu.pipeline_mode<synchronous>, transform_indices = @transform_1, window_bounds = array<i64: 1, 196>}, {pipeline_mode = #tpu.pipeline_mode<synchronous>, transform_indices = @transform_2, window_bounds = array<i64: 1, 196>}, {transform_indices = @transform_3, window_bounds = array<i64: 196, 128>}, {transform_indices = @transform_4, window_bounds = array<i64: 1, 128>}, {transform_indices = @transform_5, window_bounds = array<i64: 1, 128>}, {transform_indices = @transform_6, window_bounds = array<i64: 256, 128>}]} {
    %c0 = arith.constant 0 : index
    %c0_0 = arith.constant 0 : index
    %0 = vector.load %arg2[%c0, %c0_0] : memref<256x196xf32, #tpu.memory_space<vmem>>, vector<256x196xf32>
    %c0_1 = arith.constant 0 : index
    %c0_2 = arith.constant 0 : index
    %1 = vector.load %arg3[%c0_1, %c0_2] : memref<1x196xf32, #tpu.memory_space<vmem>>, vector<1x196xf32>
    %2 = vector.broadcast %1 : vector<1x196xf32> to vector<256x196xf32>
    %3 = arith.mulf %0, %2 : vector<256x196xf32>
    %c0_3 = arith.constant 0 : index
    %c0_4 = arith.constant 0 : index
    %4 = vector.load %arg4[%c0_3, %c0_4] : memref<1x196xf32, #tpu.memory_space<vmem>>, vector<1x196xf32>
    %5 = vector.broadcast %4 : vector<1x196xf32> to vector<256x196xf32>
    %6 = arith.addf %3, %5 : vector<256x196xf32>
    %7 = arith.truncf %6 : vector<256x196xf32> to vector<256x196xbf16>
    %c0_5 = arith.constant 0 : index
    %c0_6 = arith.constant 0 : index
    %8 = vector.load %arg5[%c0_5, %c0_6] : memref<196x128xbf16, #tpu.memory_space<vmem>>, vector<196x128xbf16>
    %cst = arith.constant dense<0.000000e+00> : vector<256x128xf32>
    %9 = tpu.matmul %7, %8, %cst {dimension_numbers = #tpu.dot_dimension_numbers<[1], [0], [0], [1], [0, 0, 1, 1], [], []>} : vector<256x196xbf16>, vector<196x128xbf16>, vector<256x128xf32> -> vector<256x128xf32>
    %c0_7 = arith.constant 0 : index
    %c0_8 = arith.constant 0 : index
    %10 = vector.load %arg6[%c0_7, %c0_8] : memref<1x128xf32, #tpu.memory_space<vmem>>, vector<1x128xf32>
    %11 = vector.broadcast %10 : vector<1x128xf32> to vector<256x128xf32>
    %12 = arith.mulf %9, %11 : vector<256x128xf32>
    %c0_9 = arith.constant 0 : index
    %c0_10 = arith.constant 0 : index
    %13 = vector.load %arg7[%c0_9, %c0_10] : memref<1x128xf32, #tpu.memory_space<vmem>>, vector<1x128xf32>
    %14 = vector.broadcast %13 : vector<1x128xf32> to vector<256x128xf32>
    %15 = arith.addf %12, %14 : vector<256x128xf32>
    %cst_11 = arith.constant 0.000000e+00 : f32
    %16 = vector.broadcast %cst_11 : f32 to vector<256x128xf32>
    %17 = arith.maximumf %15, %16 : vector<256x128xf32>
    %c0_12 = arith.constant 0 : index
    %c0_13 = arith.constant 0 : index
    %18 = vector.load %arg8[%c0_12, %c0_13] : memref<256x128xf32, #tpu.memory_space<vmem>>, vector<256x128xf32>
    tpu.vector_store %arg8[%c0_12, %c0_13], %17 {strides = array<i32>} : memref<256x128xf32, #tpu.memory_space<vmem>>, vector<256x128xf32>,
    return
  }
  func.func @transform_0(%arg0: i32, %arg1: i32) -> (i32, i32) {
    %c0_i32 = arith.constant 0 : i32
    %c0_i32_0 = arith.constant 0 : i32
    return %arg0, %c0_i32 : i32, i32
  }
  func.func @transform_1(%arg0: i32, %arg1: i32) -> (i32, i32) {
    %c0_i32 = arith.constant 0 : i32
    %c0_i32_0 = arith.constant 0 : i32
    %c0_i32_1 = arith.constant 0 : i32
    return %c0_i32, %c0_i32_0 : i32, i32
  }
  func.func @transform_2(%arg0: i32, %arg1: i32) -> (i32, i32) {
    %c0_i32 = arith.constant 0 : i32
    %c0_i32_0 = arith.constant 0 : i32
    %c0_i32_1 = arith.constant 0 : i32
    return %c0_i32, %c0_i32_0 : i32, i32
  }
  func.func @transform_3(%arg0: i32, %arg1: i32) -> (i32, i32) {
    %c0_i32 = arith.constant 0 : i32
    %c0_i32_0 = arith.constant 0 : i32
    return %c0_i32, %arg1 : i32, i32
  }
  func.func @transform_4(%arg0: i32, %arg1: i32) -> (i32, i32) {
    %c0_i32 = arith.constant 0 : i32
    %c0_i32_0 = arith.constant 0 : i32
    return %c0_i32, %arg1 : i32, i32
  }
  func.func @transform_5(%arg0: i32, %arg1: i32) -> (i32, i32) {
    %c0_i32 = arith.constant 0 : i32
    %c0_i32_0 = arith.constant 0 : i32
    return %c0_i32, %arg1 : i32, i32
  }
  func.func @transform_6(%arg0: i32, %arg1: i32) -> (i32, i32) {
    %c0_i32 = arith.constant 0 : i32
    return %arg0, %arg1 : i32, i32
  }
}

</mosaic_0001>

<bundles_post_ra>
// kernel: tpu_custom_call.1
= control target key start
LH: loop header
LB: loop body
LE: loop exit
PB: predicated region body
PF: predicated region fallthrough
CT: control target
= control target key end

     0   :  { %11 = vsyncpa [#allocation3], 0  ;;  %s1984_s0 = inlined_call_operand.vmem [shape: f32[2048,196], index: 0, kind: input, shape index: {}]   ;;  %s1985_s1 = inlined_call_operand.vmem [shape: f32[1,196], index: 1, kind: input, shape index: {}]   ;;  %s1986_s2 = inlined_call_operand.vmem [shape: f32[1,196], index: 2, kind: input, shape index: {}]   ;;  %s1987_s3 = inlined_call_operand.vmem [shape: bf16[196,128], index: 3, kind: input, shape index: {}]   ;;  %s1988_s4 = inlined_call_operand.vmem [shape: f32[1,128], index: 4, kind: input, shape index: {}]   ;;  %s1989_s5 = inlined_call_operand.vmem [shape: f32[1,128], index: 5, kind: input, shape index: {}]   ;;  %s1990_s6 = inlined_call_operand.hbm [shape: f32[2048,128], index: 6, kind: output, shape index: {}]  }
   0x1   :  { %13 = vsyncpa [#allocation3 + $0x1], 0  ;;  %s1412_s21 = smov 0   ;;  %s1414_s22 = smov 0  }
   0x2   :  { %s1416_s23 = smov 0   ;;  %s1418_s24 = smov 0  }
   0x3   :  { %s1420_s25 = smov 0   ;;  %s1422_s26 = smov 0  }
   0x4 LB: > { %s1146_s27 = sadd.s32 4294967295, %s1371_s26   ;;  %s1147_s28 = sadd.s32 4294967294, %s1371_s26   ;;  %s1371_s26 = sphi %s1422_s26, %s19_s26   ;;  %s1367_s25 = sphi %s1420_s25, %s1997_s25   ;;  %s1363_s24 = sphi %s1418_s24, %s1996_s24   ;;  %s1359_s23 = sphi %s1416_s23, %s1995_s23   ;;  %s1355_s22 = sphi %s1414_s22, %s1994_s22   ;;  %s1351_s21 = sphi %s1412_s21, %s1993_s21  }
   0x5   : > { %s31_s29 = sadd.s32 1, %s1367_s25  ;;  %s186_s30 = sadd.s32 1, %s1359_s23 }
   0x6   : > { %p33_p0 = scmp.ge.s32.totalorder %s31_s29, 8  ;;  %p196_p1 = scmp.ne.s32.totalorder %s1359_s23, %s1355_s22 }
   0x7   : > { %p197_p2 = scmp.eq.s32.totalorder %s1146_s27, 7  ;;  %p202_p3 = scmp.ne.s32.totalorder %s1355_s22, %s1351_s21 }
   0x8   : > { %s1999_s29 = smov (%p33_p0, %s31_s29), 0  ;;  %p203_p5 = scmp.eq.s32.totalorder %s1147_s28, 7 }
   0x9   : > { %p1452_p4 = por %p197_p2, %p196_p1  ;;  %s181_s8 = ssub.s32 %s1367_s25, %s1999_s29 }
   0xa   : > { %p1153_p6 = scmp.ge.s32.totalorder %s1371_s26, 1  ;;  %p184_p7 = scmp.eq.s32.totalorder %s181_s8, 0 }
   0xb   : > { %p1459_p8 = por %p203_p5, %p202_p3  ;;  %p256_p9 = scmp.lt.s32.totalorder %s1371_s26, 9 }
   0xc   : > { %s1465_s10 = scalar_select %p184_p7, %s1359_s23, %s186_s30  }
   0xd   : > { %p257_p10 = pnand %p1153_p6, %p256_p9 }
   0xe   : > { %v1280_v0 = vld [vmem:[%s1987_s3] sm:$0xff] (!%p257_p10)   ;;  %v1373_v1 = vmov (!%p257_p10), 0   ;;  %v1281_v2 = vld [vmem:[%s1987_s3 + $0x8] sm:$0xff] (!%p257_p10)   ;;  %s1155_s15 = sshll.u32 (!%p257_p10), %s1363_s24, 5  ;;  %v382_v3 = vlaneseq (!%p257_p10)  ;;  %v1282_v4 = vld [vmem:[%s1987_s3 + $0x10] sm:$0xff] (!%p257_p10)   ;;  %vm664_vm0 = vcmask (!%p257_p10), 556032  }
   0xf   : > { %260 = sbr.rel (%p257_p10) target bundleno = 358 (0x166), region = 44  ;;  %717 = vmatprep.subr.bf16.mxu0 (!%p257_p10), %v1373_v1  ;;  %1196 = vmatprep.subr.bf16.mxu1 (!%p257_p10), %v1373_v1  ;;  %p298_p11 = scmp.lt.s32.totalorder (!%p257_p10), %s1155_s15, 255  ;;  %v1283_v6 = vld [vmem:[%s1987_s3 + $0x18] sm:$0xff] (!%p257_p10)   ;;  %v380_v10 = vld [vmem:[%s1985_s1] sm:$0x3] (!%p257_p10)  ;;  %v1285_v21 = vld [vmem:[%s1987_s3 + $0x28] sm:$0xff] (!%p257_p10)  }
  0x10   : > { %718 = vmatpush1.bf16.msra.mxu0 (!%p257_p10), %v1280_v0  ;;  %1209 = vmatpush1.bf16.msra.mxu1 (!%p257_p10), %v1280_v0  ;;  %v1481_v5 = vshrl.u32 (!%p257_p10), %v382_v3, 7  ;;  %v456_v11 = vld [vmem:[%s1986_s2] sm:$0x3] (!%p257_p10)  ;;  %v1286_v28 = vld [vmem:[%s1987_s3 + $0x30] sm:$0xff] (!%p257_p10)   ;;  %v1287_v29 = vld [vmem:[%s1987_s3 + $0x38] sm:$0xff] (!%p257_p10)   ;;  %vm713_vm1 = vcmask (!%p257_p10), 1041408  }
  0x11   : > { %719 = vmatprep.subr.bf16.mxu0 (!%p257_p10), %v1373_v1  ;;  %1197 = vmatprep.subr.bf16.mxu1 (!%p257_p10), %v1373_v1  ;;  %v1284_v12 = vld [vmem:[%s1987_s3 + $0x20] sm:$0xff] (!%p257_p10)   ;;  %v1289_v33 = vld [vmem:[%s1987_s3 + $0x48] sm:$0xff] (!%p257_p10)   ;;  %v1290_v43 = vld [vmem:[%s1987_s3 + $0x50] sm:$0xff] (!%p257_p10)   ;;  %s1195_s12 = sshll.u32 (!%p257_p10), %s1363_s24, 12 }
  0x12   : > { %v388_v7 = vsub.s32 (!%p257_p10), 1, %v1481_v5  ;;  %v384_v30 = vsub.s32 (!%p257_p10), 0, %v1481_v5  ;;  %v1288_v31 = vld [vmem:[%s1987_s3 + $0x40] sm:$0xff] (!%p257_p10)   ;;  %v1291_v56 = vld [vmem:[%s1987_s3 + $0x58] sm:$0xff] (!%p257_p10)   ;;  %s1928_s16 = scalar_lea.hbm (!%p257_p10), %s1990_s6, %s1195_s12 }
  0x13   : > { %v1292_v60 = vld [vmem:[%s1987_s3 + $0x60] ss:$0 sps:$4 sm:$0x33] (!%p257_p10)  }
  0x14   : > { %720 = vmatpush1.bf16.msra.mxu0 (!%p257_p10), %v1281_v2  ;;  %1210 = vmatpush1.bf16.msra.mxu1 (!%p257_p10), %v1281_v2  ;;  %v1507_v13 = vrot.slane (!%p257_p10), %v380_v10, %v388_v7  ;;  %v1513_v16 = vrot.slane (!%p257_p10), %v456_v11, %v388_v7  ;;  %v1546_v32 = vrot.slane (!%p257_p10), %v380_v10, %v384_v30 }
  0x15   : > { %721 = vmatprep.subr.bf16.mxu0 (!%p257_p10), %v1373_v1  ;;  %1198 = vmatprep.subr.bf16.mxu1 (!%p257_p10), %v1373_v1  ;;  %v1559_v40 = vrot.slane (!%p257_p10), %v456_v11, %v384_v30 }
  0x16   : > { %s2001_s15 = smov (!%p298_p11, %s1155_s15), 255 }
  0x17   : > { %s1194_s18 = sshll.u32 %s2001_s15, 4 }
  0x18   : > { %s1488_s27 = scalar_lea.vmem %s1984_s0, %s1194_s18  ;;  %722 = vmatpush1.bf16.msra.mxu0 %v1282_v4  ;;  %1211 = vmatpush1.bf16.msra.mxu1 %v1282_v4  ;;  %s1374_s18 = smov [#allocation2]  }
  0x19   : > { %723 = vmatprep.subr.bf16.mxu0 %v1373_v1  ;;  %1199 = vmatprep.subr.bf16.mxu1 %v1373_v1  ;;  %v317_v8 = vld [vmem:[%s1488_s27 + $0x8] sm:$0xff]  ;;  %v319_v9 = vld [vmem:[%s1488_s27 + $0x18] sm:$0xff]  ;;  %v316_v34 = vld [vmem:[%s1488_s27] sm:$0xff]  ;;  %s1297_s19 = sshll.u32 %s1374_s18, 4  ;;  %s1298_s19 = int_to_ptr.vmem [resolvable:$false] %s1297_s19 }
  0x1a   : > { %v349_v14 = vld [vmem:[%s1488_s27 + $0x108] sm:$0xff]  ;;  %v351_v15 = vld [vmem:[%s1488_s27 + $0x118] sm:$0xff]  ;;  %v393_v17 = vmul.f32 %v1507_v13, %v317_v8  ;;  %v395_v18 = vmul.f32 %v1507_v13, %v319_v9  ;;  %v318_v35 = vld [vmem:[%s1488_s27 + $0x10] sm:$0xff]  ;;  %v392_v41 = vmul.f32 %v1546_v32, %v316_v34  ;;  %s1299_s20 = scalar_lea.vmem %s1298_s19, 8192 }
  0x1b   : > { %v425_v19 = vmul.f32 %v1507_v13, %v349_v14  ;;  %v427_v20 = vmul.f32 %v1507_v13, %v351_v15  ;;  %v348_v36 = vld [vmem:[%s1488_s27 + $0x100] sm:$0xff]  ;;  %v350_v37 = vld [vmem:[%s1488_s27 + $0x110] sm:$0xff]  ;;  %v321_v38 = vld [vmem:[%s1488_s27 + $0x28] sm:$0xff]  ;;  %v394_v42 = vmul.f32 %v1546_v32, %v318_v35 }
  0x1c   : > { %724 = vmatpush1.bf16.msra.mxu0 %v1283_v6  ;;  %1212 = vmatpush1.bf16.msra.mxu1 %v1283_v6  ;;  %v469_v22 = vadd.f32 %v1513_v16, %v393_v17  ;;  %v471_v23 = vadd.f32 %v1513_v16, %v395_v18  ;;  %v323_v39 = vld [vmem:[%s1488_s27 + $0x38] sm:$0xff]  ;;  %v424_v44 = vmul.f32 %v1546_v32, %v348_v36  ;;  %v353_v46 = vld [vmem:[%s1488_s27 + $0x128] sm:$0xff]  ;;  %v320_v50 = vld [vmem:[%s1488_s27 + $0x20] sm:$0xff] }
  0x1d   : > { %725 = vmatprep.subr.bf16.mxu0 %v1373_v1  ;;  %1200 = vmatprep.subr.bf16.mxu1 %v1373_v1  ;;  %v501_v24 = vadd.f32 %v1513_v16, %v425_v19  ;;  %v503_v25 = vadd.f32 %v1513_v16, %v427_v20  ;;  %v426_v45 = vmul.f32 %v1546_v32, %v350_v37  ;;  %v355_v47 = vld [vmem:[%s1488_s27 + $0x138] sm:$0xff]  ;;  %v322_v55 = vld [vmem:[%s1488_s27 + $0x30] sm:$0xff]  ;;  %v352_v59 = vld [vmem:[%s1488_s27 + $0x120] sm:$0xff]  ;;  %v715_v19 = vsel %vm713_vm1, %v1292_v60, 0 }
  0x1e   : > { %v533_v26 = vpack.c.bf16 %v471_v23, %v469_v22  ;;  %v397_v48 = vmul.f32 %v1507_v13, %v321_v38  ;;  %v399_v49 = vmul.f32 %v1507_v13, %v323_v39  ;;  %v1576_v51 = vadd.f32 %v1559_v40, %v392_v41  ;;  %v354_v0 = vld [vmem:[%s1488_s27 + $0x130] sm:$0xff]  ;;  %v325_v2 = vld [vmem:[%s1488_s27 + $0x48] sm:$0xff]  ;;  %v327_v4 = vld [vmem:[%s1488_s27 + $0x58] sm:$0xff] }
  0x1f   : > { %v549_v27 = vpack.c.bf16 %v503_v25, %v501_v24  ;;  %v1579_v52 = vadd.f32 %v1559_v40, %v394_v42  ;;  %v429_v53 = vmul.f32 %v1507_v13, %v353_v46  ;;  %v431_v54 = vmul.f32 %v1507_v13, %v355_v47  ;;  %v357_v9 = vld [vmem:[%s1488_s27 + $0x148] sm:$0xff]  ;;  %v359_v10 = vld [vmem:[%s1488_s27 + $0x158] sm:$0xff]  ;;  %v324_v34 = vld [vmem:[%s1488_s27 + $0x40] sm:$0xff] }
  0x20   : > { %726 = vmatpush1.bf16.msra.mxu0 %v1284_v12  ;;  %1213 = vmatpush1.bf16.msra.mxu1 %v1284_v12  ;;  %v500_v57 = vadd.f32 %v1559_v40, %v424_v44  ;;  %v502_v58 = vadd.f32 %v1559_v40, %v426_v45  ;;  %v1596_v61 = vadd.f32 %v1513_v16, %v397_v48  ;;  %v341_v11 = vld [vmem:[%s1488_s27 + $0xc8] sm:$0xff]  ;;  %v343_v17 = vld [vmem:[%s1488_s27 + $0xd8] sm:$0xff]  ;;  %v326_v37 = vld [vmem:[%s1488_s27 + $0x50] sm:$0xff] }
  0x21   : > { %727 = vmatprep.subr.bf16.mxu0 %v1373_v1  ;;  %1201 = vmatprep.subr.bf16.mxu1 %v1373_v1  ;;  %v475_v62 = vadd.f32 %v1513_v16, %v399_v49  ;;  %v396_v63 = vmul.f32 %v1546_v32, %v320_v50  ;;  %v398_v3 = vmul.f32 %v1546_v32, %v322_v55  ;;  %v373_v18 = vld [vmem:[%s1488_s27 + $0x1c8] sm:$0xff]  ;;  %v356_v38 = vld [vmem:[%s1488_s27 + $0x140] sm:$0xff]  ;;  %v347_v47 = vld [vmem:[%s1488_s27 + $0xf8] sm:$0xff] }
  0x22   : > { %1171 = vmatprep.mubr.msk.bf16.mxu0 %vm664_vm0, %v533_v26  ;;  %1179 = vmatprep.mubr.msk.bf16.mxu1 %vm664_vm0, %v549_v27  ;;  %v532_v5 = vpack.c.bf16 %v1579_v52, %v1576_v51  ;;  %v505_v6 = vadd.f32 %v1513_v16, %v429_v53  ;;  %v507_v7 = vadd.f32 %v1513_v16, %v431_v54  ;;  %v375_v26 = vld [vmem:[%s1488_s27 + $0x1d8] sm:$0xff]  ;;  %v345_v46 = vld [vmem:[%s1488_s27 + $0xe8] sm:$0xff]  ;;  %v358_v49 = vld [vmem:[%s1488_s27 + $0x150] sm:$0xff] }
  0x23   : > { %v428_v8 = vmul.f32 %v1546_v32, %v352_v59  ;;  %v548_v12 = vpack.c.bf16 %v502_v58, %v500_v57  ;;  %v430_v14 = vmul.f32 %v1546_v32, %v354_v0  ;;  %v401_v15 = vmul.f32 %v1507_v13, %v325_v2  ;;  %v377_v52 = vld [vmem:[%s1488_s27 + $0x1e8] sm:$0xff]  ;;  %v379_v53 = vld [vmem:[%s1488_s27 + $0x1f8] sm:$0xff] }
  0x24   : > { %728 = vmatpush1.bf16.msra.mxu0 %v1285_v21  ;;  %1214 = vmatpush1.bf16.msra.mxu1 %v1285_v21  ;;  %v535_v20 = vpack.c.bf16 %v475_v62, %v1596_v61  ;;  %v1621_v21 = vadd.f32 %v1559_v40, %v396_v63  ;;  %v403_v22 = vmul.f32 %v1507_v13, %v327_v4  ;;  %v329_v57 = vld [vmem:[%s1488_s27 + $0x68] sm:$0xff]  ;;  %v331_v58 = vld [vmem:[%s1488_s27 + $0x78] sm:$0xff] }
  0x25   : > { %729 = vmatprep.subr.bf16.mxu0 %v1373_v1  ;;  %1202 = vmatprep.subr.bf16.mxu1 %v1373_v1  ;;  %v1625_v23 = vadd.f32 %v1559_v40, %v398_v3  ;;  %v433_v24 = vmul.f32 %v1507_v13, %v357_v9  ;;  %v435_v25 = vmul.f32 %v1507_v13, %v359_v10  ;;  %v361_v60 = vld [vmem:[%s1488_s27 + $0x168] sm:$0xff]  ;;  %v363_v61 = vld [vmem:[%s1488_s27 + $0x178] sm:$0xff] }
  0x26   : > { %v551_v27 = vpack.c.bf16 %v507_v7, %v505_v6  ;;  %v449_v30 = vmul.f32 %v1507_v13, %v373_v18  ;;  %v479_v36 = vadd.f32 %v1513_v16, %v403_v22  ;;  %v451_v41 = vmul.f32 %v1507_v13, %v375_v26 }
  0x27   : > { %v509_v44 = vadd.f32 %v1513_v16, %v433_v24  ;;  %v511_v45 = vadd.f32 %v1513_v16, %v435_v25  ;;  %v400_v48 = vmul.f32 %v1546_v32, %v324_v34  ;;  %v402_v55 = vmul.f32 %v1546_v32, %v326_v37  ;;  %v330_v24 = vld [vmem:[%s1488_s27 + $0x70] sm:$0xff]  ;;  %v360_v25 = vld [vmem:[%s1488_s27 + $0x160] sm:$0xff] }
  0x28   : > { %730 = vmatpush1.bf16.msra.mxu0 %v1286_v28  ;;  %1215 = vmatpush1.bf16.msra.mxu1 %v1286_v28  ;;  %v504_v28 = vadd.f32 %v1559_v40, %v428_v8  ;;  %v1648_v42 = vadd.f32 %v1513_v16, %v449_v30  ;;  %v1661_v51 = vadd.f32 %v1513_v16, %v451_v41  ;;  %v335_v30 = vld [vmem:[%s1488_s27 + $0x98] sm:$0xff] }
  0x29   : > { %731 = vmatprep.subr.bf16.mxu0 %v1373_v1  ;;  %1203 = vmatprep.subr.bf16.mxu1 %v1373_v1  ;;  %v421_v63 = vmul.f32 %v1507_v13, %v345_v46  ;;  %v423_v0 = vmul.f32 %v1507_v13, %v347_v47  ;;  %v553_v2 = vpack.c.bf16 %v511_v45, %v509_v44 }
  0x2a   : > { %v561_v62 = vpack.c.bf16 %v1661_v51, %v1648_v42  ;;  %v434_v3 = vmul.f32 %v1546_v32, %v358_v49  ;;  %v453_v4 = vmul.f32 %v1507_v13, %v377_v52  ;;  %v405_v6 = vmul.f32 %v1507_v13, %v329_v57 }
  0x2b   : > { %v407_v7 = vmul.f32 %v1507_v13, %v331_v58  ;;  %v1683_v8 = vadd.f32 %v1513_v16, %v421_v63  ;;  %v1686_v9 = vadd.f32 %v1513_v16, %v423_v0  ;;  %v437_v10 = vmul.f32 %v1507_v13, %v361_v60  ;;  %v332_v58 = vld [vmem:[%s1488_s27 + $0x80] sm:$0xff]  ;;  %v366_v0 = vld [vmem:[%s1488_s27 + $0x190] sm:$0xff] }
  0x2c   : > { %732 = vmatpush1.bf16.msra.mxu0 %v1287_v29  ;;  %1216 = vmatpush1.bf16.msra.mxu1 %v1287_v29  ;;  %v419_v29 = vmul.f32 %v1507_v13, %v343_v17  ;;  %v476_v17 = vadd.f32 %v1559_v40, %v400_v48  ;;  %v478_v18 = vadd.f32 %v1559_v40, %v402_v55  ;;  %v364_v63 = vld [vmem:[%s1488_s27 + $0x180] sm:$0xff] }
  0x2d   : > { %733 = vmatprep.subr.bf16.mxu0 %v1373_v1  ;;  %1204 = vmatprep.subr.bf16.mxu1 %v1373_v1  ;;  %v510_v22 = vadd.f32 %v1559_v40, %v434_v3  ;;  %v483_v26 = vadd.f32 %v1513_v16, %v407_v7  ;;  %v436_v37 = vmul.f32 %v1546_v32, %v360_v25  ;;  %v339_v3 = vld [vmem:[%s1488_s27 + $0xb8] sm:$0xff] }
  0x2e   : > { %v1644_v39 = vadd.f32 %v1513_v16, %v419_v29  ;;  %v333_v29 = vld [vmem:[%s1488_s27 + $0x88] sm:$0xff]  ;;  %v536_v41 = vpack.c.bf16 %v478_v18, %v476_v17  ;;  %v411_v45 = vmul.f32 %v1507_v13, %v335_v30  ;;  %v440_v18 = vmul.f32 %v1546_v32, %v364_v63  ;;  %v336_v30 = vld [vmem:[%s1488_s27 + $0xa0] sm:$0xff] }
  0x2f   : > { %v409_v44 = vmul.f32 %v1507_v13, %v333_v29 }
  0x30   : > { %734 = vmatpush1.bf16.msra.mxu0 %v1288_v31  ;;  %1217 = vmatpush1.bf16.msra.mxu1 %v1288_v31  ;;  %v506_v31 = vadd.f32 %v1559_v40, %v430_v14  ;;  %v487_v57 = vadd.f32 %v1513_v16, %v411_v45 }
  0x31   : > { %735 = vmatprep.subr.bf16.mxu0 %v1373_v1  ;;  %1205 = vmatprep.subr.bf16.mxu1 %v1373_v1 }
  0x32   : > { %v550_v54 = vpack.c.bf16 %v506_v31, %v504_v28  ;;  %v365_v31 = vld [vmem:[%s1488_s27 + $0x188] sm:$0xff] }
  0x33   : > { %v441_v48 = vmul.f32 %v1507_v13, %v365_v31 }
  0x34   : > { %736 = vmatpush1.bf16.msra.mxu0 %v1289_v33  ;;  %1218 = vmatpush1.bf16.msra.mxu1 %v1289_v33  ;;  %v477_v33 = vadd.f32 %v1513_v16, %v401_v15  ;;  %v547_v15 = vpack.c.bf16 %v1686_v9, %v1683_v8  ;;  %v1825_v8 = vld [vmem:[%s1989_s5] ss:$0 sm:$0xff] }
  0x35   : > { %737 = vmatprep.subr.bf16.mxu0 %v1373_v1  ;;  %1206 = vmatprep.subr.bf16.mxu1 %v1373_v1  ;;  %v517_v60 = vadd.f32 %v1513_v16, %v441_v48 }
  0x36   : > { %v537_v59 = vpack.c.bf16 %v479_v36, %v477_v33  ;;  %v367_v33 = vld [vmem:[%s1488_s27 + $0x198] sm:$0xff]  ;;  %v406_v36 = vmul.f32 %v1546_v32, %v330_v24 }
  0x37   : > { %v443_v49 = vmul.f32 %v1507_v13, %v367_v33 }
  0x38   : > { %738 = vmatpush1.bf16.msra.mxu0 %v1290_v43  ;;  %1219 = vmatpush1.bf16.msra.mxu1 %v1290_v43  ;;  %v534_v43 = vpack.c.bf16 %v1625_v23, %v1621_v21  ;;  %v481_v23 = vadd.f32 %v1513_v16, %v405_v6 }
  0x39   : > { %739 = vmatprep.subr.bf16.mxu0 %v1373_v1  ;;  %1207 = vmatprep.subr.bf16.mxu1 %v1373_v1 }
  0x3a   : > { %v539_v46 = vpack.c.bf16 %v483_v26, %v481_v23  ;;  %v415_v23 = vmul.f32 %v1507_v13, %v339_v3 }
  0x3c   : > { %740 = vmatpush1.bf16.msra.mxu0 %v1291_v56  ;;  %1220 = vmatpush1.bf16.msra.mxu1 %v1291_v56  ;;  %v432_v56 = vmul.f32 %v1546_v32, %v356_v38 }
  0x3d   : > { %741 = vmatprep.subr.bf16.mxu0 %v1373_v1  ;;  %1208 = vmatprep.subr.bf16.mxu1 %v1373_v1  ;;  %v417_v1 = vmul.f32 %v1507_v13, %v341_v11  ;;  %v439_v11 = vmul.f32 %v1507_v13, %v363_v61  ;;  %v519_v61 = vadd.f32 %v1513_v16, %v443_v49 }
  0x3e   : > { %v508_v21 = vadd.f32 %v1559_v40, %v432_v56  ;;  %v485_v56 = vadd.f32 %v1513_v16, %v409_v44 }
  0x3f   : > { %v1638_v35 = vadd.f32 %v1513_v16, %v417_v1  ;;  %v362_v1 = vld [vmem:[%s1488_s27 + $0x170] sm:$0xff]  ;;  %v515_v28 = vadd.f32 %v1513_v16, %v439_v11 }
  0x40   : > { %742 = vmatpush1.bf16.msra.mxu0 %v715_v19  ;;  %1221 = vmatpush1.bf16.msra.mxu1 %v715_v19  ;;  %v328_v19 = vld [vmem:[%s1488_s27 + $0x60] sm:$0xff]  ;;  %v438_v38 = vmul.f32 %v1546_v32, %v362_v1  ;;  %v541_v17 = vpack.c.bf16 %v487_v57, %v485_v56  ;;  %v374_v57 = vld [vmem:[%s1488_s27 + $0x1d0] sm:$0xff] }
  0x41   : > { %v545_v50 = vpack.c.bf16 %v1644_v39, %v1638_v35  ;;  %v404_v34 = vmul.f32 %v1546_v32, %v328_v19  ;;  %v442_v19 = vmul.f32 %v1546_v32, %v366_v0  ;;  %v372_v56 = vld [vmem:[%s1488_s27 + $0x1c0] sm:$0xff]  ;;  %v450_v0 = vmul.f32 %v1546_v32, %v374_v57 }
  0x42   : > { %v514_v55 = vadd.f32 %v1559_v40, %v438_v38  ;;  %v448_v63 = vmul.f32 %v1546_v32, %v372_v56 }
  0x43   : > { %750 = vmatmul.mubr.bf16.vlgmr.msra.gmra.mrb[0].mxu0 %v532_v5  ;;  %814 = vmatmul.mubr.bf16.vlgmr.msra.gmra.mrb[0].mxu1 %v548_v12  ;;  %v455_v5 = vmul.f32 %v1507_v13, %v379_v53  ;;  %v1691_v12 = vadd.f32 %v1513_v16, %v453_v4  ;;  %v480_v52 = vadd.f32 %v1559_v40, %v404_v34  ;;  %v369_v4 = vld [vmem:[%s1488_s27 + $0x1a8] sm:$0xff]  ;;  %v338_v34 = vld [vmem:[%s1488_s27 + $0xb0] sm:$0xff] }
  0x44   : > { %1172 = vmatprep.mubr.msk.bf16.mxu0 %vm664_vm0, %v535_v20  ;;  %1180 = vmatprep.mubr.msk.bf16.mxu1 %vm664_vm0, %v551_v27  ;;  %v513_v27 = vadd.f32 %v1513_v16, %v437_v10  ;;  %v482_v53 = vadd.f32 %v1559_v40, %v406_v36  ;;  %v408_v10 = vmul.f32 %v1546_v32, %v332_v58  ;;  %v368_v36 = vld [vmem:[%s1488_s27 + $0x1a0] sm:$0xff] }
  0x45   : > { %v1694_v14 = vadd.f32 %v1513_v16, %v455_v5  ;;  %v371_v5 = vld [vmem:[%s1488_s27 + $0x1b8] sm:$0xff]  ;;  %v445_v24 = vmul.f32 %v1507_v13, %v369_v4  ;;  %v414_v44 = vmul.f32 %v1546_v32, %v338_v34  ;;  %v444_v45 = vmul.f32 %v1546_v32, %v368_v36 }
  0x46   : > { %v555_v47 = vpack.c.bf16 %v515_v28, %v513_v27  ;;  %v538_v6 = vpack.c.bf16 %v482_v53, %v480_v52  ;;  %v447_v25 = vmul.f32 %v1507_v13, %v371_v5  ;;  %v484_v1 = vadd.f32 %v1559_v40, %v408_v10  ;;  %v376_v10 = vld [vmem:[%s1488_s27 + $0x1e0] sm:$0xff] }
  0x47   : > { %v563_v20 = vpack.c.bf16 %v1694_v14, %v1691_v12  ;;  %v516_v27 = vadd.f32 %v1559_v40, %v440_v18  ;;  %v518_v28 = vadd.f32 %v1559_v40, %v442_v19  ;;  %v521_v31 = vadd.f32 %v1513_v16, %v445_v24 }
  0x48   : > { %v523_v33 = vadd.f32 %v1513_v16, %v447_v25  ;;  %v490_v49 = vadd.f32 %v1559_v40, %v414_v44  ;;  %v520_v52 = vadd.f32 %v1559_v40, %v444_v45  ;;  %v524_v4 = vadd.f32 %v1559_v40, %v448_v63 }
  0x49   : > { %v526_v5 = vadd.f32 %v1559_v40, %v450_v0 }
  0x4a   : > { %v559_v48 = vpack.c.bf16 %v523_v33, %v521_v31 }
  0x4b   : > { %758 = vmatmul.mubr.bf16.gmra.mrb[4].mxu0 %v534_v43  ;;  %822 = vmatmul.mubr.bf16.gmra.mrb[4].mxu1 %v550_v54  ;;  %v552_v43 = vpack.c.bf16 %v510_v22, %v508_v21  ;;  %v512_v54 = vadd.f32 %v1559_v40, %v436_v37  ;;  %v557_v22 = vpack.c.bf16 %v519_v61, %v517_v60  ;;  %v370_v37 = vld [vmem:[%s1488_s27 + $0x1b0] sm:$0xff] }
  0x4c   : > { %1173 = vmatprep.mubr.msk.bf16.mxu0 %vm664_vm0, %v537_v59  ;;  %1181 = vmatprep.mubr.msk.bf16.mxu1 %vm664_vm0, %v553_v2  ;;  %v334_v59 = vld [vmem:[%s1488_s27 + $0x90] sm:$0xff]  ;;  %v337_v2 = vld [vmem:[%s1488_s27 + $0xa8] sm:$0xff]  ;;  %v560_v19 = vpack.c.bf16 %v526_v5, %v524_v4 }
  0x4d   : > { %v554_v7 = vpack.c.bf16 %v514_v55, %v512_v54  ;;  %v410_v11 = vmul.f32 %v1546_v32, %v334_v59  ;;  %v413_v21 = vmul.f32 %v1507_v13, %v337_v2  ;;  %v491_v13 = vadd.f32 %v1513_v16, %v415_v23  ;;  %v340_v54 = vld [vmem:[%s1488_s27 + $0xc0] sm:$0xff]  ;;  %v342_v55 = vld [vmem:[%s1488_s27 + $0xd0] sm:$0xff] }
  0x4e   : > { %v416_v58 = vmul.f32 %v1546_v32, %v340_v54  ;;  %v418_v59 = vmul.f32 %v1546_v32, %v342_v55  ;;  %v1820_v23 = vld [vmem:[%s1988_s4] ss:$0 sm:$0xff] }
  0x4f   : > { %v486_v26 = vadd.f32 %v1559_v40, %v410_v11  ;;  %v489_v29 = vadd.f32 %v1513_v16, %v413_v21  ;;  %v378_v11 = vld [vmem:[%s1488_s27 + $0x1f0] sm:$0xff] }
  0x50   : > { %v492_v2 = vadd.f32 %v1559_v40, %v416_v58  ;;  %v494_v3 = vadd.f32 %v1559_v40, %v418_v59  ;;  %v454_v35 = vmul.f32 %v1546_v32, %v378_v11 }
  0x51   : > { %v540_v38 = vpack.c.bf16 %v486_v26, %v484_v1 }
  0x52   : > { %v530_v51 = vadd.f32 %v1559_v40, %v454_v35 }
  0x53   : > { %766 = vmatmul.mubr.bf16.gmra.mrb[8].mxu0 %v536_v41  ;;  %830 = vmatmul.mubr.bf16.gmra.mrb[8].mxu1 %v552_v43  ;;  %v412_v41 = vmul.f32 %v1546_v32, %v336_v30  ;;  %v556_v43 = vpack.c.bf16 %v518_v28, %v516_v27 }
  0x54   : > { %1174 = vmatprep.mubr.msk.bf16.mxu0 %vm664_vm0, %v539_v46  ;;  %1182 = vmatprep.mubr.msk.bf16.mxu1 %vm664_vm0, %v555_v47  ;;  %v446_v46 = vmul.f32 %v1546_v32, %v370_v37  ;;  %v543_v47 = vpack.c.bf16 %v491_v13, %v489_v29 }
  0x55   : > { %v488_v16 = vadd.f32 %v1559_v40, %v412_v41 }
  0x56   : > { %v522_v53 = vadd.f32 %v1559_v40, %v446_v46 }
  0x57   : > { %v542_v60 = vpack.c.bf16 %v490_v49, %v488_v16 }
  0x58   : > { %v558_v61 = vpack.c.bf16 %v522_v53, %v520_v52 }
  0x5b   : > { %774 = vmatmul.mubr.bf16.gmra.mrb[12].mxu0 %v538_v6  ;;  %838 = vmatmul.mubr.bf16.gmra.mrb[12].mxu1 %v554_v7  ;;  %v344_v6 = vld [vmem:[%s1488_s27 + $0xe0] sm:$0xff]  ;;  %v346_v7 = vld [vmem:[%s1488_s27 + $0xf0] sm:$0xff]  ;;  %s294_s27 = sand.u32 1, %s1355_s22  }
  0x5c   : > { %1175 = vmatprep.mubr.msk.bf16.mxu0 %vm664_vm0, %v541_v17  ;;  %1183 = vmatprep.mubr.msk.bf16.mxu1 %vm664_vm0, %v557_v22  ;;  %v544_v17 = vpack.c.bf16 %v494_v3, %v492_v2  ;;  %v420_v18 = vmul.f32 %v1546_v32, %v344_v6  ;;  %v422_v21 = vmul.f32 %v1546_v32, %v346_v7  ;;  %s1154_s8 = sshll.u32 %s294_s27, 8  ;;  %s1938_s24 = scalar_lea.sflag [#allocation3], %s294_s27 }
  0x5d   : > { %v452_v22 = vmul.f32 %v1546_v32, %v376_v10  ;;  %s1837_s11 = scalar_lea.vmem [#allocation2], %s1154_s8 }
  0x5e   : > { %v496_v39 = vadd.f32 %v1559_v40, %v420_v18  ;;  %v498_v42 = vadd.f32 %v1559_v40, %v422_v21  ;;  %s1035_s13 = sshll.u32 %s1837_s11, 4  ;;  %s1930_s13 = int_to_ptr.vmem [resolvable:$true] %s1035_s13 }
  0x5f   : > { %s1293_s17 = scalar_lea.vmem %s1930_s13, 4096  ;;  %p1300_p1 = scmp.lt.s32.totalorder %s1930_s13, %s1298_s19 }
  0x60   : > { %v546_v32 = vpack.c.bf16 %v498_v42, %v496_v39  ;;  %p1294_p12 = scmp.ne.s32.totalorder %s1930_s13, %s1293_s17  ;;  %p1301_p2 = scmp.lt.s32.totalorder %s1299_s20, %s1293_s17 }
  0x62   : > { %p1295_p13 = pnand %p1294_p12, %p1452_p4  ;;  %p1302_p3 = por %p1301_p2, %p1300_p1 }
  0x63   : > { %782 = vmatmul.mubr.bf16.gmra.mrb[16].mxu0 %v540_v38  ;;  %846 = vmatmul.mubr.bf16.gmra.mrb[16].mxu1 %v556_v43 }
  0x64   : > { %1176 = vmatprep.mubr.msk.bf16.mxu0 %vm664_vm0, %v543_v47  ;;  %1184 = vmatprep.mubr.msk.bf16.mxu1 %vm664_vm0, %v559_v48  ;;  %p1296_p0 = pneg %p1295_p13 }
  0x66   : > { %p1303_p5 = pnand %p1302_p3, %p1296_p0 }
  0x6b   : > { %790 = vmatmul.mubr.bf16.gmra.mrb[20].mxu0 %v542_v60  ;;  %854 = vmatmul.mubr.bf16.gmra.mrb[20].mxu1 %v558_v61 }
  0x6c   : > { %1177 = vmatprep.mubr.msk.bf16.mxu0 %vm664_vm0, %v545_v50  ;;  %1185 = vmatprep.mubr.msk.bf16.mxu1 %vm664_vm0, %v561_v62  ;;  %v528_v50 = vadd.f32 %v1559_v40, %v452_v22 }
  0x6e   : > { %v562_v62 = vpack.c.bf16 %v530_v51, %v528_v50 }
  0x73   : > { %798 = vmatmul.mubr.bf16.gmra.mrb[24].mxu0 %v544_v17  ;;  %862 = vmatmul.mubr.bf16.gmra.mrb[24].mxu1 %v560_v19 }
  0x74   : > { %1178 = vmatprep.mubr.msk.bf16.mxu0 %vm664_vm0, %v547_v15  ;;  %1186 = vmatprep.mubr.msk.bf16.mxu1 %vm664_vm0, %v563_v20 }
  0x7b   : > { %806 = vmatmul.mubr.bf16.gmra.mrb[28].mxu0 %v546_v32  ;;  %870 = vmatmul.mubr.bf16.gmra.mrb[28].mxu1 %v562_v62 }
 0x116   : > { %v751_v40 = vpop.f32.mrb[0].mxu0  ;;  %v815_v9 = vpop.f32.mrb[0].mxu1 }
 0x117   : > { %v885_v12 = vmul.f32 %v1820_v23, %v751_v40  ;;  %v901_v14 = vmul.f32 %v1820_v23, %v815_v9  ;;  %v753_v15 = vpop.f32.mrb[1].mxu0  ;;  %v817_v20 = vpop.f32.mrb[1].mxu1 }
 0x118   : > { %v754_v24 = vpop.f32.mrb[2].mxu0  ;;  %v818_v25 = vpop.f32.mrb[2].mxu1 }
 0x119   : > { %v924_v1 = vadd.f32 %v1825_v8, %v885_v12  ;;  %v940_v26 = vadd.f32 %v1825_v8, %v901_v14  ;;  %v886_v27 = vmul.f32 %v1820_v23, %v754_v24  ;;  %v902_v28 = vmul.f32 %v1820_v23, %v818_v25  ;;  %v756_v29 = vpop.f32.mrb[3].mxu0  ;;  %v820_v30 = vpop.f32.mrb[3].mxu1 }
 0x11b   : > { %v956_v13 = vmax.f32 %v924_v1, 0.0  ;;  %v972_v31 = vmax.f32 %v940_v26, 0.0  ;;  %v925_v33 = vadd.f32 %v1825_v8, %v886_v27  ;;  %v941_v34 = vadd.f32 %v1825_v8, %v902_v28 }
 0x11d   : > { %988 = vst [vmem:[%s1837_s11] sm:$0xff] %v956_v13  ;;  %1004 = vst [vmem:[%s1837_s11 + $0x80] sm:$0xff] %v972_v31  ;;  %v957_v36 = vmax.f32 %v925_v33, 0.0  ;;  %v973_v37 = vmax.f32 %v941_v34, 0.0 }
 0x11e   : > { %v759_v38 = vpop.f32.mrb[4].mxu0  ;;  %v823_v41 = vpop.f32.mrb[4].mxu1 }
 0x11f   : > { %989 = vst [vmem:[%s1837_s11 + $0x8] sm:$0xff] %v957_v36  ;;  %1005 = vst [vmem:[%s1837_s11 + $0x88] sm:$0xff] %v973_v37  ;;  %v887_v43 = vmul.f32 %v1820_v23, %v759_v38  ;;  %v903_v44 = vmul.f32 %v1820_v23, %v823_v41  ;;  %v761_v45 = vpop.f32.mrb[5].mxu0  ;;  %v825_v46 = vpop.f32.mrb[5].mxu1 }
 0x120   : > { %v762_v47 = vpop.f32.mrb[6].mxu0  ;;  %v826_v48 = vpop.f32.mrb[6].mxu1 }
 0x121   : > { %v926_v16 = vadd.f32 %v1825_v8, %v887_v43  ;;  %v942_v49 = vadd.f32 %v1825_v8, %v903_v44  ;;  %v888_v52 = vmul.f32 %v1820_v23, %v762_v47  ;;  %v904_v53 = vmul.f32 %v1820_v23, %v826_v48  ;;  %v764_v54 = vpop.f32.mrb[7].mxu0  ;;  %v828_v55 = vpop.f32.mrb[7].mxu1 }
 0x123   : > { %v958_v56 = vmax.f32 %v926_v16, 0.0  ;;  %v974_v57 = vmax.f32 %v942_v49, 0.0  ;;  %v927_v58 = vadd.f32 %v1825_v8, %v888_v52  ;;  %v943_v59 = vadd.f32 %v1825_v8, %v904_v53 }
 0x125   : > { %990 = vst [vmem:[%s1837_s11 + $0x10] sm:$0xff] %v958_v56  ;;  %1006 = vst [vmem:[%s1837_s11 + $0x90] sm:$0xff] %v974_v57  ;;  %v959_v60 = vmax.f32 %v927_v58, 0.0  ;;  %v975_v61 = vmax.f32 %v943_v59, 0.0 }
 0x126   : > { %v767_v63 = vpop.f32.mrb[8].mxu0  ;;  %v831_v0 = vpop.f32.mrb[8].mxu1 }
 0x127   : > { %991 = vst [vmem:[%s1837_s11 + $0x18] sm:$0xff] %v959_v60  ;;  %1007 = vst [vmem:[%s1837_s11 + $0x98] sm:$0xff] %v975_v61  ;;  %v889_v2 = vmul.f32 %v1820_v23, %v767_v63  ;;  %v905_v3 = vmul.f32 %v1820_v23, %v831_v0  ;;  %v769_v4 = vpop.f32.mrb[9].mxu0  ;;  %v833_v5 = vpop.f32.mrb[9].mxu1 }
 0x128   : > { %v770_v6 = vpop.f32.mrb[10].mxu0  ;;  %v834_v7 = vpop.f32.mrb[10].mxu1 }
 0x129   : > { %v928_v10 = vadd.f32 %v1825_v8, %v889_v2  ;;  %v944_v11 = vadd.f32 %v1825_v8, %v905_v3  ;;  %v890_v17 = vmul.f32 %v1820_v23, %v770_v6  ;;  %v906_v18 = vmul.f32 %v1820_v23, %v834_v7  ;;  %v772_v19 = vpop.f32.mrb[11].mxu0  ;;  %v836_v21 = vpop.f32.mrb[11].mxu1 }
 0x12b   : > { %v960_v22 = vmax.f32 %v928_v10, 0.0  ;;  %v976_v35 = vmax.f32 %v944_v11, 0.0  ;;  %v929_v39 = vadd.f32 %v1825_v8, %v890_v17  ;;  %v945_v42 = vadd.f32 %v1825_v8, %v906_v18 }
 0x12d   : > { %992 = vst [vmem:[%s1837_s11 + $0x20] sm:$0xff] %v960_v22  ;;  %1008 = vst [vmem:[%s1837_s11 + $0xa0] sm:$0xff] %v976_v35  ;;  %v961_v50 = vmax.f32 %v929_v39, 0.0  ;;  %v977_v51 = vmax.f32 %v945_v42, 0.0 }
 0x12e   : > { %v775_v32 = vpop.f32.mrb[12].mxu0  ;;  %v839_v62 = vpop.f32.mrb[12].mxu1 }
 0x12f   : > { %993 = vst [vmem:[%s1837_s11 + $0x28] sm:$0xff] %v961_v50  ;;  %1009 = vst [vmem:[%s1837_s11 + $0xa8] sm:$0xff] %v977_v51  ;;  %v891_v40 = vmul.f32 %v1820_v23, %v775_v32  ;;  %v907_v9 = vmul.f32 %v1820_v23, %v839_v62  ;;  %v777_v12 = vpop.f32.mrb[13].mxu0  ;;  %v841_v14 = vpop.f32.mrb[13].mxu1 }
 0x130   : > { %v778_v15 = vpop.f32.mrb[14].mxu0  ;;  %v842_v20 = vpop.f32.mrb[14].mxu1 }
 0x131   : > { %v930_v24 = vadd.f32 %v1825_v8, %v891_v40  ;;  %v946_v25 = vadd.f32 %v1825_v8, %v907_v9  ;;  %v892_v1 = vmul.f32 %v1820_v23, %v778_v15  ;;  %v908_v26 = vmul.f32 %v1820_v23, %v842_v20  ;;  %v780_v27 = vpop.f32.mrb[15].mxu0  ;;  %v844_v28 = vpop.f32.mrb[15].mxu1 }
 0x133   : > { %v962_v29 = vmax.f32 %v930_v24, 0.0  ;;  %v978_v30 = vmax.f32 %v946_v25, 0.0  ;;  %v931_v13 = vadd.f32 %v1825_v8, %v892_v1  ;;  %v947_v31 = vadd.f32 %v1825_v8, %v908_v26 }
 0x135   : > { %994 = vst [vmem:[%s1837_s11 + $0x30] sm:$0xff] %v962_v29  ;;  %1010 = vst [vmem:[%s1837_s11 + $0xb0] sm:$0xff] %v978_v30  ;;  %v963_v33 = vmax.f32 %v931_v13, 0.0  ;;  %v979_v34 = vmax.f32 %v947_v31, 0.0 }
 0x136   : > { %v783_v36 = vpop.f32.mrb[16].mxu0  ;;  %v847_v37 = vpop.f32.mrb[16].mxu1 }
 0x137   : > { %995 = vst [vmem:[%s1837_s11 + $0x38] sm:$0xff] %v963_v33  ;;  %1011 = vst [vmem:[%s1837_s11 + $0xb8] sm:$0xff] %v979_v34  ;;  %v893_v38 = vmul.f32 %v1820_v23, %v783_v36  ;;  %v909_v41 = vmul.f32 %v1820_v23, %v847_v37  ;;  %v785_v43 = vpop.f32.mrb[17].mxu0  ;;  %v849_v44 = vpop.f32.mrb[17].mxu1 }
 0x138   : > { %v786_v45 = vpop.f32.mrb[18].mxu0  ;;  %v850_v46 = vpop.f32.mrb[18].mxu1 }
 0x139   : > { %v932_v47 = vadd.f32 %v1825_v8, %v893_v38  ;;  %v948_v48 = vadd.f32 %v1825_v8, %v909_v41  ;;  %v894_v16 = vmul.f32 %v1820_v23, %v786_v45  ;;  %v910_v49 = vmul.f32 %v1820_v23, %v850_v46  ;;  %v788_v52 = vpop.f32.mrb[19].mxu0  ;;  %v852_v53 = vpop.f32.mrb[19].mxu1 }
 0x13b   : > { %v964_v54 = vmax.f32 %v932_v47, 0.0  ;;  %v980_v55 = vmax.f32 %v948_v48, 0.0  ;;  %v933_v56 = vadd.f32 %v1825_v8, %v894_v16  ;;  %v949_v57 = vadd.f32 %v1825_v8, %v910_v49 }
 0x13d   : > { %996 = vst [vmem:[%s1837_s11 + $0x40] sm:$0xff] %v964_v54  ;;  %1012 = vst [vmem:[%s1837_s11 + $0xc0] sm:$0xff] %v980_v55  ;;  %v965_v58 = vmax.f32 %v933_v56, 0.0  ;;  %v981_v59 = vmax.f32 %v949_v57, 0.0 }
 0x13e   : > { %v791_v60 = vpop.f32.mrb[20].mxu0  ;;  %v855_v61 = vpop.f32.mrb[20].mxu1 }
 0x13f   : > { %997 = vst [vmem:[%s1837_s11 + $0x48] sm:$0xff] %v965_v58  ;;  %1013 = vst [vmem:[%s1837_s11 + $0xc8] sm:$0xff] %v981_v59  ;;  %v895_v63 = vmul.f32 %v1820_v23, %v791_v60  ;;  %v911_v0 = vmul.f32 %v1820_v23, %v855_v61  ;;  %v793_v2 = vpop.f32.mrb[21].mxu0  ;;  %v857_v3 = vpop.f32.mrb[21].mxu1 }
 0x140   : > { %v794_v4 = vpop.f32.mrb[22].mxu0  ;;  %v858_v5 = vpop.f32.mrb[22].mxu1 }
 0x141   : > { %v934_v6 = vadd.f32 %v1825_v8, %v895_v63  ;;  %v950_v7 = vadd.f32 %v1825_v8, %v911_v0  ;;  %v896_v10 = vmul.f32 %v1820_v23, %v794_v4  ;;  %v912_v11 = vmul.f32 %v1820_v23, %v858_v5  ;;  %v796_v17 = vpop.f32.mrb[23].mxu0  ;;  %v860_v18 = vpop.f32.mrb[23].mxu1 }
 0x143   : > { %v966_v19 = vmax.f32 %v934_v6, 0.0  ;;  %v982_v21 = vmax.f32 %v950_v7, 0.0  ;;  %v935_v22 = vadd.f32 %v1825_v8, %v896_v10  ;;  %v951_v35 = vadd.f32 %v1825_v8, %v912_v11 }
 0x145   : > { %998 = vst [vmem:[%s1837_s11 + $0x50] sm:$0xff] %v966_v19  ;;  %1014 = vst [vmem:[%s1837_s11 + $0xd0] sm:$0xff] %v982_v21  ;;  %v967_v39 = vmax.f32 %v935_v22, 0.0  ;;  %v983_v42 = vmax.f32 %v951_v35, 0.0 }
 0x146   : > { %v799_v50 = vpop.f32.mrb[24].mxu0  ;;  %v863_v51 = vpop.f32.mrb[24].mxu1 }
 0x147   : > { %999 = vst [vmem:[%s1837_s11 + $0x58] sm:$0xff] %v967_v39  ;;  %1015 = vst [vmem:[%s1837_s11 + $0xd8] sm:$0xff] %v983_v42  ;;  %v897_v32 = vmul.f32 %v1820_v23, %v799_v50  ;;  %v913_v62 = vmul.f32 %v1820_v23, %v863_v51  ;;  %v801_v40 = vpop.f32.mrb[25].mxu0  ;;  %v865_v9 = vpop.f32.mrb[25].mxu1 }
 0x148   : > { %v802_v12 = vpop.f32.mrb[26].mxu0  ;;  %v866_v14 = vpop.f32.mrb[26].mxu1 }
 0x149   : > { %v936_v15 = vadd.f32 %v1825_v8, %v897_v32  ;;  %v952_v20 = vadd.f32 %v1825_v8, %v913_v62  ;;  %v898_v24 = vmul.f32 %v1820_v23, %v802_v12  ;;  %v914_v25 = vmul.f32 %v1820_v23, %v866_v14  ;;  %v804_v1 = vpop.f32.mrb[27].mxu0  ;;  %v868_v26 = vpop.f32.mrb[27].mxu1 }
 0x14b   : > { %v968_v27 = vmax.f32 %v936_v15, 0.0  ;;  %v984_v28 = vmax.f32 %v952_v20, 0.0  ;;  %v937_v29 = vadd.f32 %v1825_v8, %v898_v24  ;;  %v953_v30 = vadd.f32 %v1825_v8, %v914_v25 }
 0x14d   : > { %1000 = vst [vmem:[%s1837_s11 + $0x60] sm:$0xff] %v968_v27  ;;  %1016 = vst [vmem:[%s1837_s11 + $0xe0] sm:$0xff] %v984_v28  ;;  %v969_v13 = vmax.f32 %v937_v29, 0.0  ;;  %v985_v31 = vmax.f32 %v953_v30, 0.0 }
 0x14e   : > { %v807_v33 = vpop.f32.mrb[28].mxu0  ;;  %v871_v34 = vpop.f32.mrb[28].mxu1 }
 0x14f   : > { %1001 = vst [vmem:[%s1837_s11 + $0x68] sm:$0xff] %v969_v13  ;;  %1017 = vst [vmem:[%s1837_s11 + $0xe8] sm:$0xff] %v985_v31  ;;  %v899_v36 = vmul.f32 %v1820_v23, %v807_v33  ;;  %v915_v37 = vmul.f32 %v1820_v23, %v871_v34  ;;  %v809_v38 = vpop.f32.mrb[29].mxu0  ;;  %v873_v41 = vpop.f32.mrb[29].mxu1 }
 0x150   : > { %v810_v43 = vpop.f32.mrb[30].mxu0  ;;  %v874_v44 = vpop.f32.mrb[30].mxu1 }
 0x151   : > { %v938_v45 = vadd.f32 %v1825_v8, %v899_v36  ;;  %v954_v46 = vadd.f32 %v1825_v8, %v915_v37  ;;  %v900_v47 = vmul.f32 %v1820_v23, %v810_v43  ;;  %v916_v48 = vmul.f32 %v1820_v23, %v874_v44  ;;  %v812_v16 = vpop.f32.mrb[31].mxu0  ;;  %v876_v49 = vpop.f32.mrb[31].mxu1 }
 0x153   : > { %v970_v52 = vmax.f32 %v938_v45, 0.0  ;;  %v986_v53 = vmax.f32 %v954_v46, 0.0  ;;  %v939_v54 = vadd.f32 %v1825_v8, %v900_v47  ;;  %v955_v55 = vadd.f32 %v1825_v8, %v916_v48 }
 0x155   : > { %1002 = vst [vmem:[%s1837_s11 + $0x70] sm:$0xff] %v970_v52  ;;  %1018 = vst [vmem:[%s1837_s11 + $0xf0] sm:$0xff] %v986_v53  ;;  %v971_v23 = vmax.f32 %v939_v54, 0.0  ;;  %v987_v56 = vmax.f32 %v955_v55, 0.0 }
 0x157   : > { %1003 = vst [vmem:[%s1837_s11 + $0x78] sm:$0xff] %v971_v23  ;;  %1019 = vst [vmem:[%s1837_s11 + $0xf8] sm:$0xff] %v987_v56 }
 0x158   : > { %1306 = shalt.err (!%p1303_p5)
}
 0x159   : > { %s1307_s27 = scalar_lea.hbm %s1928_s16, 4096  ;;  %s1311_s8 = scalar_lea.hbm %s1990_s6, 32768 }
 0x15a   : > { %p1308_p6 = scmp.ne.s32.totalorder %s1928_s16, %s1307_s27  ;;  %p1312_p10 = scmp.lt.u32.totalorder %s1928_s16, %s1990_s6 }
 0x15b   : > { %p1313_p11 = scmp.lt.u32.totalorder %s1311_s8, %s1307_s27  ;;  %p1315_p13 = scmp.lt.u32.totalorder %s1307_s27, %s1928_s16 }
 0x15c   : > { %p1309_p7 = pnand %p1308_p6, %p1452_p4 }
 0x15d   : > { %p1314_p12 = por %p1313_p11, %p1312_p10 }
 0x15e   : > { %p1310_p9 = pneg %p1309_p7 }
 0x15f   : > { %p1316_p0 = por %p1315_p13, %p1314_p12 }
 0x161   : > { %p1317_p1 = pnand %p1316_p0, %p1310_p9 }
 0x163   : > { %1320 = shalt.err (!%p1317_p1)
}
 0x164   : > { %s1375_s14 = smov 128   ;;  %s1376_s15 = smov 8  }
 0x165   : > { %1222 = dma.vmem_to_hbm [thread:$0]  (%p1452_p4), %s1930_s13, 4096, %s1928_s16, %s1938_s24, %s1375_s14, %s1375_s14, %s1376_s15  }
 0x166 PF: > { %p1228_p2 = scmp.ge.s32.totalorder %s1371_s26, 2  ;;  %s1050_s17 = sand.u32 1, %s1351_s21  }
 0x167   : > { %s1051_s18 = scalar_lea.sflag [#allocation3], %s1050_s17 }
 0x168   : > { %p1225_p3 = pnand %p1228_p2, %p1459_p8 }
 0x16a   : > { %1346 = dma.done.wait (!%p1225_p3), %s1051_s18, 4096  }
 0x16b   : > { %1348 = vsyncadd (!%p1225_p3), %s1051_s18, 4294963200  ;;  %s19_s26 = sadd.s32 1, %s1371_s26   ;;  %s1993_s21 = smov %s1355_s22 }
 0x16c   : > { %p16_p5 = scmp.ge.s32.totalorder %s19_s26, 10   ;;  %s1994_s22 = smov %s1359_s23 }
 0x16d   : > { %s1995_s23 = smov %s1465_s10  ;;  %s1996_s24 = smov %s1367_s25 }
 0x16e   : > { %s1997_s25 = smov %s1999_s29  ;;  %18 = sbr.rel (!%p16_p5) target bundleno = 4 (0x4), region = 88 }
 0x175   :  { %1056 = vsyncpa [#allocation3], 1 }
 0x176   :  { %1058 = vsyncpa [#allocation3 + $0x1], 1 }

</bundles_post_ra>
